<compile_context>
chip_gen: v6e
topology: v6e:2x2x1
jax: 0.10.0
libtpu: 0.0.40
codegen_flags: <defaults>
</compile_context>

<pallas_src>
import jax
import jax.numpy as jnp
from jax import lax
from jax.experimental import pallas as pl
from jax.experimental.pallas import tpu as pltpu


def _round_up(x: int, m: int) -> int:
    return (x + m - 1) // m * m


def perceptron_kernel(x_ref, w_ref, b_ref, o_ref):
    # x_ref: (TB, D_in), w_ref: (D_out_p, D_in) [PyTorch layout], b_ref: (1, D_out_p)
    x = x_ref[...]
    w = w_ref[...]
    b = b_ref[...]

    # x @ w.T on the MXU without any HBM-side transpose: contract dim 1 of x
    # with dim 1 of w, accumulate in f32.
    logits = lax.dot_general(
        x, w,
        dimension_numbers=(((1,), (1,)), ((), ())),
        preferred_element_type=jnp.float32,
    ) + b

    # Numerically-stable softmax along dim=1 (feature axis).  Padded columns
    # carry a -1e30 bias -> exp underflows to 0, so they do not perturb the
    # max or the denominator.
    m = jnp.max(logits, axis=1, keepdims=True)
    e = jnp.exp(logits - m)
    denom = jnp.sum(e, axis=1, keepdims=True)
    # EUP reciprocal (vrcp) + VPU multiply: the divide is effectively free.
    o_ref[...] = e * pl.reciprocal(denom, approx=True)


def perceptron_forward(x, weight, bias, *, tb=None):
    """x: (B, D_in) f32; weight: (D_out, D_in) f32 (PyTorch layout); bias: (D_out,)."""
    B, d_in = x.shape
    d_out = weight.shape[0]

    x = x.astype(jnp.float32)
    weight = weight.astype(jnp.float32)
    bias = bias.astype(jnp.float32)

    # --- Lane-dense output: pad D_out up to a multiple of 128 lanes. ---
    d_out_p = _round_up(d_out, 128)
    if d_out_p != d_out:
        pad = d_out_p - d_out
        weight = jnp.pad(weight, ((0, pad), (0, 0)))                     # zero rows
        bias = jnp.pad(bias, (0, pad), constant_values=jnp.float32(-1e30))
    b2 = bias.reshape(1, d_out_p)

    # --- Batch tile: sublane-aligned (multiple of 8), sized well under the
    # 64 MiB-per-TC VMEM of v7x (resident W + 2x in-bufs + 2x out-bufs). ---
    if tb is None:
        tb = min(_round_up(B, 8), 512)
    B_p = _round_up(B, tb)
    if B_p != B:
        x = jnp.pad(x, ((0, B_p - B), (0, 0)))

    grid = (pl.cdiv(B_p, tb),)

    out = pl.pallas_call(
        perceptron_kernel,
        out_shape=jax.ShapeDtypeStruct((B_p, d_out_p), jnp.float32),
        grid=grid,
        in_specs=[
            pl.BlockSpec((tb, d_in), lambda i: (i, 0)),        # x: tiled over batch
            pl.BlockSpec((d_out_p, d_in), lambda i: (0, 0)),   # weight: VMEM-resident
            pl.BlockSpec((1, d_out_p), lambda i: (0, 0)),      # bias: VMEM-resident
        ],
        out_specs=pl.BlockSpec((tb, d_out_p), lambda i: (i, 0)),
        compiler_params=pltpu.CompilerParams(
            dimension_semantics=("parallel",),   # megacore sharding on v7x
            vmem_limit_bytes=32 << 20,           # safe on v5e/v6e/v7x; tiny usage here
        ),
    )(x, weight, b2)

    # Slice away batch + lane padding.
    return out[:B, :d_out]


def reference_forward(x, weight, bias):
    logits = x @ weight.T + bias
    return jax.nn.softmax(logits, axis=1)


if __name__ == "__main__":
    # Small shapes implied by the module: X is (batch, input_size),
    # output is (batch, output_size).
    batch, input_size, output_size = 8, 32, 16

    key = jax.random.PRNGKey(0)
    kx, kw, kb = jax.random.split(key, 3)

    x = jax.random.normal(kx, (batch, input_size), dtype=jnp.float32)

    # Deterministic parameter init (mimics nn.Linear's uniform(-1/sqrt(fan_in), ...)).
    bound = 1.0 / jnp.sqrt(jnp.float32(input_size))
    weight = jax.random.uniform(
        kw, (output_size, input_size), dtype=jnp.float32, minval=-bound, maxval=bound
    )
    bias = jax.random.uniform(
        kb, (output_size,), dtype=jnp.float32, minval=-bound, maxval=bound
    )

    out = perceptron_forward(x, weight, bias)
    out = jax.block_until_ready(out)

    ref = reference_forward(x, weight, bias)
    assert out.shape == (batch, output_size)
    # Approx EUP reciprocal => allow a slightly looser tolerance than pure f32.
    assert jnp.allclose(out, ref, atol=2e-3, rtol=2e-3), "mismatch vs reference"
    # Softmax rows sum to 1 (within approx-reciprocal error).
    assert jnp.allclose(jnp.sum(out, axis=1), jnp.ones((batch,)), atol=2e-3)

    print("KERNEL_OK")
</pallas_src>

<mosaic_0001>
module attributes {stable_mosaic.version = 11 : i64} {
  func.func @perceptron_kernel(%arg0: i32, %arg1: memref<8x32xf32, #tpu.memory_space<vmem>>, %arg2: memref<128x32xf32, #tpu.memory_space<vmem>>, %arg3: memref<1x128xf32, #tpu.memory_space<vmem>>, %arg4: memref<8x128xf32, #tpu.memory_space<vmem>>) attributes {dimension_semantics = [#tpu.dimension_semantics<parallel>], iteration_bounds = array<i64: 1>, scalar_prefetch = 0 : i64, scratch_operands = 0 : i64, tpu.core_type = #tpu.core_type<tc>, window_params = [{transform_indices = @transform_0, window_bounds = array<i64: 8, 32>}, {pipeline_mode = #tpu.pipeline_mode<synchronous>, transform_indices = @transform_1, window_bounds = array<i64: 128, 32>}, {pipeline_mode = #tpu.pipeline_mode<synchronous>, transform_indices = @transform_2, window_bounds = array<i64: 1, 128>}, {transform_indices = @transform_3, window_bounds = array<i64: 8, 128>}]} {
    %c0 = arith.constant 0 : index
    %c0_0 = arith.constant 0 : index
    %0 = vector.load %arg1[%c0, %c0_0] : memref<8x32xf32, #tpu.memory_space<vmem>>, vector<8x32xf32>
    %c0_1 = arith.constant 0 : index
    %c0_2 = arith.constant 0 : index
    %1 = vector.load %arg2[%c0_1, %c0_2] : memref<128x32xf32, #tpu.memory_space<vmem>>, vector<128x32xf32>
    %c0_3 = arith.constant 0 : index
    %c0_4 = arith.constant 0 : index
    %2 = vector.load %arg3[%c0_3, %c0_4] : memref<1x128xf32, #tpu.memory_space<vmem>>, vector<1x128xf32>
    %cst = arith.constant dense<0.000000e+00> : vector<8x128xf32>
    %3 = tpu.matmul %0, %1, %cst {dimension_numbers = #tpu.dot_dimension_numbers<[1], [1], [0], [0], [0, 0, 1, 0], [], []>} : vector<8x32xf32>, vector<128x32xf32>, vector<8x128xf32> -> vector<8x128xf32>
    %4 = vector.broadcast %2 : vector<1x128xf32> to vector<8x128xf32>
    %5 = arith.addf %3, %4 : vector<8x128xf32>
    %cst_5 = arith.constant dense<0xFF800000> : vector<8xf32>
    %6 = vector.multi_reduction <maximumf>, %5, %cst_5 [1] : vector<8x128xf32> to vector<8xf32>
    %7 = vector.shape_cast %6 : vector<8xf32> to vector<8x1xf32>
    %8 = vector.broadcast %7 : vector<8x1xf32> to vector<8x128xf32>
    %9 = arith.subf %5, %8 : vector<8x128xf32>
    %10 = math.exp %9 : vector<8x128xf32>
    %cst_6 = arith.constant dense<0.000000e+00> : vector<8xf32>
    %11 = vector.multi_reduction <add>, %10, %cst_6 [1] : vector<8x128xf32> to vector<8xf32>
    %12 = vector.shape_cast %11 : vector<8xf32> to vector<8x1xf32>
    %13 = tpu.reciprocal %12 {approx = true} : vector<8x1xf32> -> vector<8x1xf32>
    %14 = vector.broadcast %13 : vector<8x1xf32> to vector<8x128xf32>
    %15 = arith.mulf %10, %14 : vector<8x128xf32>
    %c0_7 = arith.constant 0 : index
    %c0_8 = arith.constant 0 : index
    %16 = vector.load %arg4[%c0_7, %c0_8] : memref<8x128xf32, #tpu.memory_space<vmem>>, vector<8x128xf32>
    tpu.vector_store %arg4[%c0_7, %c0_8], %15 {strides = array<i32>} : memref<8x128xf32, #tpu.memory_space<vmem>>, vector<8x128xf32>,
    return
  }
  func.func @transform_0(%arg0: i32) -> (i32, i32) {
    %c0_i32 = arith.constant 0 : i32
    %c0_i32_0 = arith.constant 0 : i32
    return %arg0, %c0_i32 : i32, i32
  }
  func.func @transform_1(%arg0: i32) -> (i32, i32) {
    %c0_i32 = arith.constant 0 : i32
    %c0_i32_0 = arith.constant 0 : i32
    %c0_i32_1 = arith.constant 0 : i32
    return %c0_i32, %c0_i32_0 : i32, i32
  }
  func.func @transform_2(%arg0: i32) -> (i32, i32) {
    %c0_i32 = arith.constant 0 : i32
    %c0_i32_0 = arith.constant 0 : i32
    %c0_i32_1 = arith.constant 0 : i32
    return %c0_i32, %c0_i32_0 : i32, i32
  }
  func.func @transform_3(%arg0: i32) -> (i32, i32) {
    %c0_i32 = arith.constant 0 : i32
    %c0_i32_0 = arith.constant 0 : i32
    return %arg0, %c0_i32 : i32, i32
  }
}

</mosaic_0001>

<bundles_post_ra>
// kernel: tpu_custom_call.1
= control target key start
LH: loop header
LB: loop body
LE: loop exit
PB: predicated region body
PF: predicated region fallthrough
CT: control target
= control target key end

     0   :  { %vm39_vm0 = vcmask 261120   ;;  %v284_v1 = vmov 0.0   ;;  %vm285_vm1 = vmmov 0   ;;  %s381_s0 = inlined_call_operand.vmem [shape: f32[8,32], index: 0, kind: input, shape index: {}]   ;;  %s382_s1 = inlined_call_operand.vmem [shape: f32[128,32], index: 1, kind: input, shape index: {}]   ;;  %s383_s2 = inlined_call_operand.vmem [shape: f32[1,128], index: 2, kind: input, shape index: {}]   ;;  %s384_s3 = inlined_call_operand.hbm [shape: f32[8,128], index: 3, kind: output, shape index: {}]  }
   0x1   :  { %v31_v0 = vld [vmem:[%s382_s1 + $0x78] sm:$0xff]  ;;  %220 = vmatprep.subr.mxu0 %v284_v1  ;;  %252 = vmatprep.mubr.msk.f32.mxu0 %vm285_vm1, %v284_v1  ;;  %v30_v2 = vld [vmem:[%s382_s1 + $0x70] sm:$0xff] }
   0x2   :  { %221 = vmatpush3.xpose.msk.msra.mxu0 %vm39_vm0, %v31_v0 }
   0x3   :  { %222 = vmatprep.subr.mxu0 %v284_v1 }
   0x6   :  { %223 = vmatpush3.xpose.msk.msra.mxu0 %vm39_vm0, %v30_v2 }
   0x7   :  { %8 = vsyncpa [#allocation3], 0  ;;  %224 = vmatprep.subr.mxu0 %v284_v1  ;;  %v29_v3 = vld [vmem:[%s382_s1 + $0x68] sm:$0xff]  ;;  %v28_v4 = vld [vmem:[%s382_s1 + $0x60] sm:$0xff] }
   0x8   :  { %v27_v5 = vld [vmem:[%s382_s1 + $0x58] sm:$0xff]  ;;  %v26_v6 = vld [vmem:[%s382_s1 + $0x50] sm:$0xff]  ;;  %v25_v7 = vld [vmem:[%s382_s1 + $0x48] sm:$0xff] }
   0x9   :  { %v24_v8 = vld [vmem:[%s382_s1 + $0x40] sm:$0xff]  ;;  %v23_v9 = vld [vmem:[%s382_s1 + $0x38] sm:$0xff]  ;;  %v22_v10 = vld [vmem:[%s382_s1 + $0x30] sm:$0xff] }
   0xa   :  { %225 = vmatpush3.xpose.msk.msra.mxu0 %vm39_vm0, %v29_v3  ;;  %v21_v11 = vld [vmem:[%s382_s1 + $0x28] sm:$0xff]  ;;  %v20_v12 = vld [vmem:[%s382_s1 + $0x20] sm:$0xff]  ;;  %v19_v13 = vld [vmem:[%s382_s1 + $0x18] sm:$0xff] }
   0xb   :  { %226 = vmatprep.subr.mxu0 %v284_v1  ;;  %v18_v14 = vld [vmem:[%s382_s1 + $0x10] sm:$0xff]  ;;  %v17_v15 = vld [vmem:[%s382_s1 + $0x8] sm:$0xff]  ;;  %v16_v16 = vld [vmem:[%s382_s1] sm:$0xff]  ;;  %s286_s1 = smov [#allocation2]  }
   0xc   :  { %v15_v17 = vld [vmem:[%s381_s0] sm:$0xff]  ;;  %s177_s0 = sshll.u32 %s286_s1, 4  ;;  %s178_s0 = int_to_ptr.vmem [resolvable:$true] %s177_s0 }
   0xd   :  { %v185_v18 = vld [vmem:[%s383_s2] ss:$0 sm:$0xff]  ;;  %s262_s21 = scalar_lea.vmem %s178_s0, 128  ;;  %p267_p1 = scmp.lt.s32.totalorder %s178_s0, %s178_s0 }
   0xe   :  { %227 = vmatpush3.xpose.msk.msra.mxu0 %vm39_vm0, %v28_v4  ;;  %p263_p0 = scmp.ne.s32.totalorder %s178_s0, %s262_s21  ;;  %p268_p2 = scmp.lt.s32.totalorder %s262_s21, %s262_s21 }
   0xf   :  { %228 = vmatprep.subr.mxu0 %v284_v1 }
  0x10   :  { %p269_p3 = por %p268_p2, %p267_p1 }
  0x12   :  { %229 = vmatpush3.xpose.msk.msra.mxu0 %vm39_vm0, %v27_v5  ;;  %p270_p4 = pnand %p269_p3, %p263_p0 }
  0x13   :  { %230 = vmatprep.subr.mxu0 %v284_v1 }
  0x16   :  { %231 = vmatpush3.xpose.msk.msra.mxu0 %vm39_vm0, %v26_v6 }
  0x17   :  { %232 = vmatprep.subr.mxu0 %v284_v1 }
  0x1a   :  { %233 = vmatpush3.xpose.msk.msra.mxu0 %vm39_vm0, %v25_v7 }
  0x1b   :  { %234 = vmatprep.subr.mxu0 %v284_v1 }
  0x1e   :  { %235 = vmatpush3.xpose.msk.msra.mxu0 %vm39_vm0, %v24_v8 }
  0x1f   :  { %236 = vmatprep.subr.mxu0 %v284_v1 }
  0x22   :  { %237 = vmatpush3.xpose.msk.msra.mxu0 %vm39_vm0, %v23_v9 }
  0x23   :  { %238 = vmatprep.subr.mxu0 %v284_v1 }
  0x26   :  { %239 = vmatpush3.xpose.msk.msra.mxu0 %vm39_vm0, %v22_v10 }
  0x27   :  { %240 = vmatprep.subr.mxu0 %v284_v1 }
  0x2a   :  { %241 = vmatpush3.xpose.msk.msra.mxu0 %vm39_vm0, %v21_v11 }
  0x2b   :  { %242 = vmatprep.subr.mxu0 %v284_v1 }
  0x2e   :  { %243 = vmatpush3.xpose.msk.msra.mxu0 %vm39_vm0, %v20_v12 }
  0x2f   :  { %244 = vmatprep.subr.mxu0 %v284_v1 }
  0x32   :  { %245 = vmatpush3.xpose.msk.msra.mxu0 %vm39_vm0, %v19_v13 }
  0x33   :  { %246 = vmatprep.subr.mxu0 %v284_v1 }
  0x36   :  { %247 = vmatpush3.xpose.msk.msra.mxu0 %vm39_vm0, %v18_v14 }
  0x37   :  { %248 = vmatprep.subr.mxu0 %v284_v1 }
  0x3a   :  { %249 = vmatpush3.xpose.msk.msra.mxu0 %vm39_vm0, %v17_v15 }
  0x3b   :  { %250 = vmatprep.subr.mxu0 %v284_v1 }
  0x3e   :  { %251 = vmatpush3.xpose.msk.msra.mxu0 %vm39_vm0, %v16_v16 }
  0x41   :  { %253 = vmatmul.mubr.msk.f32.vlgmr.msra.gmra.mxu0 %vm39_vm0, %v15_v17 }
 0x101   :  { %v157_v19 = vpop.f32.mrf.mxu0 }
 0x102   :  { %v158_v20 = vadd.f32 %v185_v18, %v157_v19 }
 0x103   :  { %v254_v21 = vpop.f32.mrf.mxu0 }
 0x104   :  { %161 = vmax.xlane.f32.xlu0 %v158_v20 }
 0x18d   :  { %v162_v22 = vpop.xlane.xlu0 %161 }
 0x18e   :  { %v163_v23 = vsub.f32 %v158_v20, %v162_v22 }
 0x190   :  { %v164_v24 = vmul.f32 1.442695, %v163_v23 }
 0x192   :  { %258 = vpow2.f32 %v164_v24 }
 0x19f   :  { %v259_v25 = vpop.eup %258 }
 0x1a0   :  { %166 = vadd.xlane.f32.xlu0 %v259_v25 }
 0x229   :  { %v167_v26 = vpop.xlane.xlu0 %166 }
 0x22a   :  { %260 = vrcp.f32 %v167_v26 }
 0x237   :  { %v261_v27 = vpop.eup %260 }
 0x238   :  { %v169_v28 = vmul.f32 %v261_v27, %v259_v25 }
 0x23a   :  { %170 = vst [vmem:[#allocation2] sm:$0xff] %v169_v28 }
 0x23b   :  { %273 = shalt.err (!%p270_p4)
}
 0x23c   :  { %180 = dma.vmem_to_hbm [thread:$0]  %s178_s0, 128, %s384_s3, [#allocation3]  }
 0x23d   :  { %282 = dma.done.wait [#allocation3], 128  }
 0x23e   :  { %283 = vsyncadd [#allocation3], 4294967168 }
 0x23f   :  { %184 = vsyncpa [#allocation3], 1 }

</bundles_post_ra>
